<compile_context>
chip_gen: v7x
topology: tpu7x:2x2x1
jax: 0.10.0
libtpu: 0.0.40
codegen_flags: <defaults>
</compile_context>

<pallas_src>
import functools
import math

import jax
import jax.numpy as jnp
from jax import lax
from jax.experimental import pallas as pl
from jax.experimental.pallas import tpu as pltpu


def _causal_reflection_kernel(x_ref, w_ref, b_ref, o_ref, *, batch, n_head, head_dim, w2):
    """Single grid step processes the whole (B*T, C) activation slab.

    x_ref : (B*T, C)
    w_ref : (C, 2*C + H*W2)    fused [Wq | Wk | Wv]   (lane-dense: 128 columns)
    b_ref : (1, 2*C + H*W2)    fused [bq | bk | bv]
    o_ref : (B*T, H*W2)        head-major output slab (== y.transpose(1,2).view(B,T,H,W*W))
    """
    BT, C = x_ref.shape
    B = batch
    T = BT // B
    H = n_head
    hd = head_dim
    scale = jnp.float32(1.0 / math.sqrt(hd))

    x = x_ref[...]                                               # (BT, C)

    # One fused lane-dense QKV projection for every (batch, token).
    qkv = jnp.dot(x, w_ref[...], preferred_element_type=jnp.float32) + b_ref[...]

    q_all = qkv[:, :C].reshape(B, T, C)                          # (B, T, H*hd)
    k_all = qkv[:, C:2 * C].reshape(B, T, C)                     # (B, T, H*hd)
    v_all = qkv[:, 2 * C:].reshape(B, T, H * w2)                 # (B, T, H*W2)

    # Stack heads along the leading ("batch of dot") dim -> (H*B, T, d).
    q = jnp.concatenate([q_all[:, :, h * hd:(h + 1) * hd] for h in range(H)], axis=0)
    k = jnp.concatenate([k_all[:, :, h * hd:(h + 1) * hd] for h in range(H)], axis=0)
    v = jnp.concatenate([v_all[:, :, h * w2:(h + 1) * w2] for h in range(H)], axis=0)

    # One batched q.k^T over every (head, batch) pair, contracting the last dims
    # (no explicit transpose).
    att = lax.dot_general(q, k, (((2,), (2,)), ((0,), (0,))),
                          preferred_element_type=jnp.float32)    # (H*B, T, T)

    # Additive causal bias built once; masked entries underflow to exactly 0 in exp.
    row = lax.broadcasted_iota(jnp.int32, (T, T), 0)             # query index t
    col = lax.broadcasted_iota(jnp.int32, (T, T), 1)             # key index s
    mask_bias = jnp.where(col <= row, 0.0, -1e30).astype(jnp.float32)   # (T, T)
    att = att * scale + mask_bias                                # broadcast over H*B

    # One numerically-stable softmax chain for every head & batch element at once.
    m = jnp.max(att, axis=-1, keepdims=True)
    p = jnp.exp(att - m)                                         # masked -> exp(-1e30) == 0
    denom = jnp.sum(p, axis=-1, keepdims=True)                   # >= 1 (diag always kept)

    # One batched p @ v and an EXACT normalisation (approx reciprocal removed).
    y = lax.dot_general(p, v, (((2,), (1,)), ((0,), (0,))),
                        preferred_element_type=jnp.float32)      # (H*B, T, W2)
    y = y / denom

    # Re-pack to the lane-dense head-major slab (B*T, H*W2) and store once.
    o_ref[...] = jnp.concatenate(
        [y[h * B:(h + 1) * B].reshape(BT, w2) for h in range(H)], axis=-1
    ).astype(o_ref.dtype)


def causal_reflection(x, w_qkv, b_qkv, n_head, width):
    """x: (B, T, C); fused QKV params; returns (B, T, H, W*W) like the module."""
    B, T, C = x.shape
    W2 = width * width
    F = w_qkv.shape[1]                              # 2*C + H*W2 (= 128 here)
    assert F == 2 * C + n_head * W2

    kernel = functools.partial(
        _causal_reflection_kernel,
        batch=B, n_head=n_head, head_dim=C // n_head, w2=W2,
    )

    x2d = x.reshape(B * T, C)                       # pure reshape, no copy

    out = pl.pallas_call(
        kernel,
        out_shape=jax.ShapeDtypeStruct((B * T, n_head * W2), jnp.float32),
        grid=(1,),                                  # single step: whole problem per call
        in_specs=[
            pl.BlockSpec((B * T, C), lambda i: (0, 0)),
            pl.BlockSpec((C, F), lambda i: (0, 0)),
            pl.BlockSpec((1, F), lambda i: (0, 0)),
        ],
        out_specs=pl.BlockSpec((B * T, n_head * W2), lambda i: (0, 0)),
        compiler_params=pltpu.CompilerParams(dimension_semantics=("arbitrary",)),
    )(x2d, w_qkv, b_qkv)

    # Pure reshape (no transpose / copy): (B*T, H*W2) -> (B, T, H, W2).
    return out.reshape(B, T, n_head, W2)


def _reference(x, wq_flat, bq_flat, wk_flat, bk_flat, wv_flat, bv_flat, n_head, width):
    """Plain-JAX mirror of the PyTorch forward (eval mode, dropout=0)."""
    B, T, C = x.shape
    hd = C // n_head
    W2 = width * width
    q = (x @ wq_flat + bq_flat).reshape(B, T, n_head, hd).transpose(0, 2, 1, 3)
    k = (x @ wk_flat + bk_flat).reshape(B, T, n_head, hd).transpose(0, 2, 1, 3)
    v = (x @ wv_flat + bv_flat).reshape(B, T, n_head, W2).transpose(0, 2, 1, 3)
    att = jnp.einsum("bhtd,bhsd->bhts", q, k) * (1.0 / math.sqrt(hd))
    mask = jnp.tril(jnp.ones((T, T), dtype=bool))
    att = jnp.where(mask, att, -jnp.inf)
    att = jax.nn.softmax(att, axis=-1)
    y = jnp.einsum("bhts,bhsw->bhtw", att, v)
    return y.transpose(0, 2, 1, 3)   # (B, T, H, W2)


if __name__ == "__main__":
    # Small shapes consistent with the module.
    B, T = 2, 8
    n_embd, n_head, width = 32, 4, 4
    W2 = width * width

    key = jax.random.PRNGKey(0)
    kx, k1, k2, k3, k4 = jax.random.split(key, 5)
    x = jax.random.normal(kx, (B, T, n_embd), jnp.float32)

    # c_attn: Linear(n_embd, 2*n_embd, bias=True)   (stored as (in, out))
    w_cattn = jax.random.normal(k1, (n_embd, 2 * n_embd), jnp.float32) / math.sqrt(n_embd)
    b_cattn = 0.02 * jax.random.normal(k2, (2 * n_embd,), jnp.float32)
    # v_proj: Linear(n_embd, n_head * width * width, bias=True)
    w_vproj = jax.random.normal(k3, (n_embd, n_head * W2), jnp.float32) / math.sqrt(n_embd)
    b_vproj = 0.02 * jax.random.normal(k4, (n_head * W2,), jnp.float32)

    # Split c_attn output into q / k (same split as .split(n_embd, dim=2)) for the reference.
    wq_flat, wk_flat = w_cattn[:, :n_embd], w_cattn[:, n_embd:]
    bq_flat, bk_flat = b_cattn[:n_embd], b_cattn[n_embd:]

    # Fused lane-dense QKV weight/bias consumed by the kernel: (C, 2C + H*W2) = (32, 128).
    w_qkv = jnp.concatenate([w_cattn, w_vproj], axis=1)
    b_qkv = jnp.concatenate([b_cattn, b_vproj], axis=0).reshape(1, -1)

    y = causal_reflection(x, w_qkv, b_qkv, n_head, width)
    y = jax.block_until_ready(y)

    y_ref = _reference(x, wq_flat, bq_flat, wk_flat, bk_flat, w_vproj, b_vproj,
                       n_head, width)

    assert y.shape == (B, T, n_head, W2), y.shape
    # Exact softmax normalisation now -> only residual MXU-pass noise remains.
    assert jnp.allclose(y, y_ref, rtol=2e-3, atol=2e-3), float(jnp.max(jnp.abs(y - y_ref)))
    print("KERNEL_OK")
</pallas_src>

<mosaic_0001>
module attributes {stable_mosaic.version = 11 : i64} {
  func.func @_causal_reflection_kernel(%arg0: i32, %arg1: memref<16x32xf32, #tpu.memory_space<vmem>>, %arg2: memref<32x128xf32, #tpu.memory_space<vmem>>, %arg3: memref<1x128xf32, #tpu.memory_space<vmem>>, %arg4: memref<16x64xf32, #tpu.memory_space<vmem>>) attributes {dimension_semantics = [#tpu.dimension_semantics<arbitrary>], iteration_bounds = array<i64: 1>, scalar_prefetch = 0 : i64, scratch_operands = 0 : i64, tpu.core_type = #tpu.core_type<tc>, window_params = [{pipeline_mode = #tpu.pipeline_mode<synchronous>, transform_indices = @transform_0, window_bounds = array<i64: 16, 32>}, {pipeline_mode = #tpu.pipeline_mode<synchronous>, transform_indices = @transform_1, window_bounds = array<i64: 32, 128>}, {pipeline_mode = #tpu.pipeline_mode<synchronous>, transform_indices = @transform_2, window_bounds = array<i64: 1, 128>}, {pipeline_mode = #tpu.pipeline_mode<synchronous>, transform_indices = @transform_3, window_bounds = array<i64: 16, 64>}]} {
    %c0 = arith.constant 0 : index
    %c0_0 = arith.constant 0 : index
    %0 = vector.load %arg1[%c0, %c0_0] : memref<16x32xf32, #tpu.memory_space<vmem>>, vector<16x32xf32>
    %c0_1 = arith.constant 0 : index
    %c0_2 = arith.constant 0 : index
    %1 = vector.load %arg2[%c0_1, %c0_2] : memref<32x128xf32, #tpu.memory_space<vmem>>, vector<32x128xf32>
    %cst = arith.constant dense<0.000000e+00> : vector<16x128xf32>
    %2 = tpu.matmul %0, %1, %cst {dimension_numbers = #tpu.dot_dimension_numbers<[1], [0], [0], [1], [0, 0, 1, 1], [], []>} : vector<16x32xf32>, vector<32x128xf32>, vector<16x128xf32> -> vector<16x128xf32>
    %c0_3 = arith.constant 0 : index
    %c0_4 = arith.constant 0 : index
    %3 = vector.load %arg3[%c0_3, %c0_4] : memref<1x128xf32, #tpu.memory_space<vmem>>, vector<1x128xf32>
    %4 = vector.broadcast %3 : vector<1x128xf32> to vector<16x128xf32>
    %5 = arith.addf %2, %4 : vector<16x128xf32>
    %6 = vector.extract_strided_slice %5 {offsets = [0, 0], sizes = [16, 32], strides = [1, 1]} : vector<16x128xf32> to vector<16x32xf32>
    %7 = vector.shape_cast %6 : vector<16x32xf32> to vector<2x8x32xf32>
    %8 = vector.extract_strided_slice %5 {offsets = [0, 32], sizes = [16, 32], strides = [1, 1]} : vector<16x128xf32> to vector<16x32xf32>
    %9 = vector.shape_cast %8 : vector<16x32xf32> to vector<2x8x32xf32>
    %10 = vector.extract_strided_slice %5 {offsets = [0, 64], sizes = [16, 64], strides = [1, 1]} : vector<16x128xf32> to vector<16x64xf32>
    %11 = vector.shape_cast %10 : vector<16x64xf32> to vector<2x8x64xf32>
    %12 = vector.extract_strided_slice %7 {offsets = [0, 0, 0], sizes = [2, 8, 8], strides = [1, 1, 1]} : vector<2x8x32xf32> to vector<2x8x8xf32>
    %13 = vector.extract_strided_slice %7 {offsets = [0, 0, 8], sizes = [2, 8, 8], strides = [1, 1, 1]} : vector<2x8x32xf32> to vector<2x8x8xf32>
    %14 = vector.extract_strided_slice %7 {offsets = [0, 0, 16], sizes = [2, 8, 8], strides = [1, 1, 1]} : vector<2x8x32xf32> to vector<2x8x8xf32>
    %15 = vector.extract_strided_slice %7 {offsets = [0, 0, 24], sizes = [2, 8, 8], strides = [1, 1, 1]} : vector<2x8x32xf32> to vector<2x8x8xf32>
    %16 = tpu.concatenate %12, %13, %14, %15 in 0 : vector<2x8x8xf32>, vector<2x8x8xf32>, vector<2x8x8xf32>, vector<2x8x8xf32> -> vector<8x8x8xf32>
    %17 = vector.extract_strided_slice %9 {offsets = [0, 0, 0], sizes = [2, 8, 8], strides = [1, 1, 1]} : vector<2x8x32xf32> to vector<2x8x8xf32>
    %18 = vector.extract_strided_slice %9 {offsets = [0, 0, 8], sizes = [2, 8, 8], strides = [1, 1, 1]} : vector<2x8x32xf32> to vector<2x8x8xf32>
    %19 = vector.extract_strided_slice %9 {offsets = [0, 0, 16], sizes = [2, 8, 8], strides = [1, 1, 1]} : vector<2x8x32xf32> to vector<2x8x8xf32>
    %20 = vector.extract_strided_slice %9 {offsets = [0, 0, 24], sizes = [2, 8, 8], strides = [1, 1, 1]} : vector<2x8x32xf32> to vector<2x8x8xf32>
    %21 = tpu.concatenate %17, %18, %19, %20 in 0 : vector<2x8x8xf32>, vector<2x8x8xf32>, vector<2x8x8xf32>, vector<2x8x8xf32> -> vector<8x8x8xf32>
    %22 = vector.extract_strided_slice %11 {offsets = [0, 0, 0], sizes = [2, 8, 16], strides = [1, 1, 1]} : vector<2x8x64xf32> to vector<2x8x16xf32>
    %23 = vector.extract_strided_slice %11 {offsets = [0, 0, 16], sizes = [2, 8, 16], strides = [1, 1, 1]} : vector<2x8x64xf32> to vector<2x8x16xf32>
    %24 = vector.extract_strided_slice %11 {offsets = [0, 0, 32], sizes = [2, 8, 16], strides = [1, 1, 1]} : vector<2x8x64xf32> to vector<2x8x16xf32>
    %25 = vector.extract_strided_slice %11 {offsets = [0, 0, 48], sizes = [2, 8, 16], strides = [1, 1, 1]} : vector<2x8x64xf32> to vector<2x8x16xf32>
    %26 = tpu.concatenate %22, %23, %24, %25 in 0 : vector<2x8x16xf32>, vector<2x8x16xf32>, vector<2x8x16xf32>, vector<2x8x16xf32> -> vector<8x8x16xf32>
    %cst_5 = arith.constant dense<0.000000e+00> : vector<8x8x8xf32>
    %27 = tpu.matmul %16, %21, %cst_5 {dimension_numbers = #tpu.dot_dimension_numbers<[2], [2], [1], [1], [0, 0, 0, 1, 1, 1], [0], [0]>} : vector<8x8x8xf32>, vector<8x8x8xf32>, vector<8x8x8xf32> -> vector<8x8x8xf32>
    %28 = tpu.iota {dimensions = array<i32: 0>} : vector<8x8xi32>
    %29 = tpu.iota {dimensions = array<i32: 1>} : vector<8x8xi32>
    %30 = arith.cmpi sle, %29, %28 : vector<8x8xi32>
    %cst_6 = arith.constant 0.000000e+00 : f32
    %cst_7 = arith.constant -1.000000e+30 : f32
    %31 = vector.broadcast %cst_6 : f32 to vector<8x8xf32>
    %32 = vector.broadcast %cst_7 : f32 to vector<8x8xf32>
    %33 = arith.select %30, %31, %32 : vector<8x8xi1>, vector<8x8xf32>
    %cst_8 = arith.constant 0.353553385 : f32
    %34 = vector.broadcast %cst_8 : f32 to vector<8x8x8xf32>
    %35 = arith.mulf %27, %34 : vector<8x8x8xf32>
    %36 = vector.shape_cast %33 : vector<8x8xf32> to vector<1x8x8xf32>
    %37 = vector.broadcast %36 : vector<1x8x8xf32> to vector<8x8x8xf32>
    %38 = arith.addf %35, %37 : vector<8x8x8xf32>
    %cst_9 = arith.constant dense<0xFF800000> : vector<8x8xf32>
    %39 = vector.multi_reduction <maximumf>, %38, %cst_9 [2] : vector<8x8x8xf32> to vector<8x8xf32>
    %40 = vector.shape_cast %39 : vector<8x8xf32> to vector<8x8x1xf32>
    %41 = vector.broadcast %40 : vector<8x8x1xf32> to vector<8x8x8xf32>
    %42 = arith.subf %38, %41 : vector<8x8x8xf32>
    %43 = math.exp %42 : vector<8x8x8xf32>
    %cst_10 = arith.constant dense<0.000000e+00> : vector<8x8xf32>
    %44 = vector.multi_reduction <add>, %43, %cst_10 [2] : vector<8x8x8xf32> to vector<8x8xf32>
    %45 = vector.shape_cast %44 : vector<8x8xf32> to vector<8x8x1xf32>
    %cst_11 = arith.constant dense<0.000000e+00> : vector<8x8x16xf32>
    %46 = tpu.matmul %43, %26, %cst_11 {dimension_numbers = #tpu.dot_dimension_numbers<[2], [1], [1], [2], [0, 0, 0, 1, 1, 2], [0], [0]>} : vector<8x8x8xf32>, vector<8x8x16xf32>, vector<8x8x16xf32> -> vector<8x8x16xf32>
    %47 = vector.broadcast %45 : vector<8x8x1xf32> to vector<8x8x16xf32>
    %48 = arith.divf %46, %47 : vector<8x8x16xf32>
    %49 = vector.extract_strided_slice %48 {offsets = [0, 0, 0], sizes = [2, 8, 16], strides = [1, 1, 1]} : vector<8x8x16xf32> to vector<2x8x16xf32>
    %50 = vector.shape_cast %49 : vector<2x8x16xf32> to vector<16x16xf32>
    %51 = vector.extract_strided_slice %48 {offsets = [2, 0, 0], sizes = [2, 8, 16], strides = [1, 1, 1]} : vector<8x8x16xf32> to vector<2x8x16xf32>
    %52 = vector.shape_cast %51 : vector<2x8x16xf32> to vector<16x16xf32>
    %53 = vector.extract_strided_slice %48 {offsets = [4, 0, 0], sizes = [2, 8, 16], strides = [1, 1, 1]} : vector<8x8x16xf32> to vector<2x8x16xf32>
    %54 = vector.shape_cast %53 : vector<2x8x16xf32> to vector<16x16xf32>
    %55 = vector.extract_strided_slice %48 {offsets = [6, 0, 0], sizes = [2, 8, 16], strides = [1, 1, 1]} : vector<8x8x16xf32> to vector<2x8x16xf32>
    %56 = vector.shape_cast %55 : vector<2x8x16xf32> to vector<16x16xf32>
    %57 = tpu.concatenate %50, %52, %54, %56 in 1 : vector<16x16xf32>, vector<16x16xf32>, vector<16x16xf32>, vector<16x16xf32> -> vector<16x64xf32>
    %c0_12 = arith.constant 0 : index
    %c0_13 = arith.constant 0 : index
    %58 = vector.load %arg4[%c0_12, %c0_13] : memref<16x64xf32, #tpu.memory_space<vmem>>, vector<16x64xf32>
    tpu.vector_store %arg4[%c0_12, %c0_13], %57 {strides = array<i32>} : memref<16x64xf32, #tpu.memory_space<vmem>>, vector<16x64xf32>,
    return
  }
  func.func @transform_0(%arg0: i32) -> (i32, i32) {
    %c0_i32 = arith.constant 0 : i32
    %c0_i32_0 = arith.constant 0 : i32
    %c0_i32_1 = arith.constant 0 : i32
    return %c0_i32, %c0_i32_0 : i32, i32
  }
  func.func @transform_1(%arg0: i32) -> (i32, i32) {
    %c0_i32 = arith.constant 0 : i32
    %c0_i32_0 = arith.constant 0 : i32
    %c0_i32_1 = arith.constant 0 : i32
    return %c0_i32, %c0_i32_0 : i32, i32
  }
  func.func @transform_2(%arg0: i32) -> (i32, i32) {
    %c0_i32 = arith.constant 0 : i32
    %c0_i32_0 = arith.constant 0 : i32
    %c0_i32_1 = arith.constant 0 : i32
    return %c0_i32, %c0_i32_0 : i32, i32
  }
  func.func @transform_3(%arg0: i32) -> (i32, i32) {
    %c0_i32 = arith.constant 0 : i32
    %c0_i32_0 = arith.constant 0 : i32
    %c0_i32_1 = arith.constant 0 : i32
    return %c0_i32, %c0_i32_0 : i32, i32
  }
}

</mosaic_0001>

<bundles_post_ra>
// kernel: tpu_custom_call.1
= control target key start
LH: loop header
LB: loop body
LE: loop exit
PB: predicated region body
PF: predicated region fallthrough
CT: control target
= control target key end

     0   :  { %8 = vsyncpa [#allocation3], 0  ;;  %s2020_s0 = inlined_call_operand.hbm [shape: f32[16,32], index: 0, kind: input, shape index: {}]   ;;  %s2021_s1 = inlined_call_operand.hbm [shape: f32[32,128], index: 1, kind: input, shape index: {}]   ;;  %s2022_s2 = inlined_call_operand.vmem [shape: f32[1,128], index: 2, kind: input, shape index: {}]   ;;  %s2023_s3 = inlined_call_operand.hbm [shape: f32[16,64], index: 3, kind: output, shape index: {}]  }
   0x1   :  { %9 = vsyncpa [#allocation6], 0 }
   0x2   :  { %10 = vsyncpa [#allocation4], 0  ;;  %s1821_s12 = smov [#allocation2]   ;;  %s1749_s16 = scalar_lea.hbm %s2020_s0, 256 }
   0x3   :  { %s16_s13 = sshll.u32 %s1821_s12, 4  ;;  %p1750_p0 = scmp.ne.s32.totalorder %s2020_s0, %s1749_s16  ;;  %s17_s13 = int_to_ptr.vmem [resolvable:$true] %s16_s13 }
   0x4   :  { %p1753_p1 = scmp.lt.u32.totalorder %s1749_s16, %s2020_s0 }
   0x6   :  { %p1755_p2 = pnand %p1753_p1, %p1750_p0 }
   0x8   :  { %1758 = shalt.err (!%p1755_p2)
}
   0x9   :  { %s1759_s21 = scalar_lea.vmem %s17_s13, 256  ;;  %p1764_p4 = scmp.lt.s32.totalorder %s17_s13, %s17_s13 }
   0xa   :  { %p1760_p3 = scmp.ne.s32.totalorder %s17_s13, %s1759_s21  ;;  %p1765_p5 = scmp.lt.s32.totalorder %s1759_s21, %s1759_s21 }
   0xc   :  { %p1766_p6 = por %p1765_p5, %p1764_p4 }
   0xe   :  { %p1767_p7 = pnand %p1766_p6, %p1760_p3 }
  0x10   :  { %1770 = shalt.err (!%p1767_p7)
}
  0x11   :  { %s1822_s22 = smov 128   ;;  %s1823_s23 = smov 8  }
  0x12   :  { %22 = dma.hbm_to_vmem [thread:$0]  %s2020_s0, 256, %s17_s13, [#allocation3], %s1822_s22, %s1822_s22, %s1823_s23  }
  0x13   :  { %s1824_s26 = smov [#allocation5]   ;;  %s1771_s30 = scalar_lea.hbm %s2021_s1, 512 }
  0x14   :  { %s28_s27 = sshll.u32 %s1824_s26, 4  ;;  %p1772_p8 = scmp.ne.s32.totalorder %s2021_s1, %s1771_s30  ;;  %s29_s27 = int_to_ptr.vmem [resolvable:$true] %s28_s27 }
  0x15   :  { %p1775_p9 = scmp.lt.u32.totalorder %s1771_s30, %s2021_s1 }
  0x17   :  { %p1777_p10 = pnand %p1775_p9, %p1772_p8 }
  0x19   :  { %1780 = shalt.err (!%p1777_p10)
}
  0x1a   :  { %s1781_s8 = scalar_lea.vmem %s29_s27, 512  ;;  %p1786_p12 = scmp.lt.s32.totalorder %s29_s27, %s29_s27 }
  0x1b   :  { %p1782_p11 = scmp.ne.s32.totalorder %s29_s27, %s1781_s8  ;;  %p1787_p13 = scmp.lt.s32.totalorder %s1781_s8, %s1781_s8 }
  0x1d   :  { %p1788_p0 = por %p1787_p13, %p1786_p12 }
  0x1f   :  { %p1789_p1 = pnand %p1788_p0, %p1782_p11 }
  0x21   :  { %1792 = shalt.err (!%p1789_p1)
}
  0x22   :  { %34 = dma.hbm_to_vmem [thread:$0]  %s2021_s1, 512, %s29_s27, [#allocation6], %s1822_s22, %s1822_s22, %s1823_s23  }
  0x23   :  { %1815 = dma.done.wait [#allocation3], 256  }
  0x24   :  { %1816 = vsyncadd [#allocation3], 4294967040 }
  0x25   :  { %1817 = dma.done.wait [#allocation6], 512  }
  0x26   :  { %1818 = vsyncadd [#allocation6], 4294966784  ;;  %vm56_vm0 = vcmask 261120   ;;  %v45_v0 = vld [vmem:[#allocation5] sm:$0xff]  ;;  %v46_v1 = vld [vmem:[#allocation5 + $0x8] sm:$0xff]  ;;  %v1825_v13 = vmov 0.0   ;;  %v765_v32 = vlaneseq }
  0x27   :  { %v47_v2 = vld [vmem:[#allocation5 + $0x10] sm:$0xff]  ;;  %v1692_v3 = vpack.c.bf16 %v46_v1, %v45_v0  ;;  %v48_v4 = vld [vmem:[#allocation5 + $0x18] sm:$0xff]  ;;  %1612 = vmatprep.subr.mxu1 %v1825_v13  ;;  %s1826_s11 = smov 112   ;;  %s1827_s12 = smov 120   ;;  %vm1828_vm1 = vmmov 0   ;;  %vm160_vm2 = vcmask 64512  }
  0x28   :  { %v43_v5 = vld [vmem:[#allocation2] sm:$0xff]  ;;  %v1696_v6 = vpack.c.bf16 %v48_v4, %v47_v2  ;;  %v44_v7 = vld [vmem:[#allocation2 + $0x8] sm:$0xff]  ;;  %1614 = vmatprep.mubr.msk.f32.mxu1 %vm1828_vm1, %v1825_v13  ;;  %s1830_s13 = smov 96   ;;  %s1831_s14 = smov 80   ;;  %v766_v33 = vshrl.u32 %v765_v32, 7  ;;  %v768_v34 = vand.u32 127, %v765_v32 }
  0x29   :  { %1609 = vmatprep.mubr.msk.f32.mxu0 %vm56_vm0, %v43_v5  ;;  %1693 = vmatprep.subr.bf16.mxu0 %v1692_v3  ;;  %v1536_v8 = vld [vmem:[%s2022_s2] ss:$0 sm:$0xff]  ;;  %s1829_s2 = smov 104   ;;  %s1832_s15 = smov 64   ;;  %v1833_v36 = vmov -1e+30  }
  0x2a   :  { %1695 = vmatpush3.bf16.msra.mxu0 %v1692_v3  ;;  %vm769_vm3 = vcmp.le.s32.totalorder %v768_v34, %v766_v33  ;;  %s1834_s16 = smov 16   ;;  %s1835_s17 = smov 32   ;;  %vm1507_vm4 = vcmask 130048   ;;  %vm1512_vm5 = vcmask 392192   ;;  %vm1515_vm6 = vcmask 523264  }
  0x2b   :  { %1697 = vmatprep.subr.bf16.mxu0 %v1696_v6  ;;  %v770_v37 = vsel %vm769_vm3, 0.0, %v1833_v36  ;;  %s1836_s18 = smov 48   ;;  %s1837_s19 = smov [#allocation7]  }
  0x2c   :  { %s1523_s20 = sshll.u32 %s1837_s19, 4  ;;  %s1524_s20 = int_to_ptr.vmem [resolvable:$true] %s1523_s20 }
  0x2d   :  { %s1793_s21 = scalar_lea.vmem %s1524_s20, 256  ;;  %p1798_p3 = scmp.lt.s32.totalorder %s1524_s20, %s1524_s20 }
  0x2e   :  { %1699 = vmatpush3.bf16.msra.mxu0 %v1696_v6  ;;  %p1794_p2 = scmp.ne.s32.totalorder %s1524_s20, %s1793_s21  ;;  %p1799_p4 = scmp.lt.s32.totalorder %s1793_s21, %s1793_s21 }
  0x2f   :  { %1622 = vmatprep.subr.mxu0 %v1825_v13 }
  0x30   :  { %p1800_p5 = por %p1799_p4, %p1798_p3 }
  0x31   :  { %1610 = vmatmul.mubr.msk.f32.vlgmr.msra.gmra.mrb[0].mxu0 %vm56_vm0, %v44_v7 }
  0x32   :  { %1624 = vmatprep.mubr.msk.f32.mxu0 %vm1828_vm1, %v1825_v13  ;;  %p1801_p6 = pnand %p1800_p5, %p1794_p2 }
 0x104   :  { %v1611_v9 = vpop.f32.mrb[0].mxu0 }
 0x105   :  { %v135_v10 = vadd.f32 %v1611_v9, %v1536_v8  ;;  %v129_v11 = vpop.f32.mrb[1].mxu0 }
 0x106   :  { %v130_v12 = vadd.f32 %v1536_v8, %v129_v11 }
 0x107   :  { %146 = vrot.lane.b32.xlu1 %v135_v10, %s1826_s11 }
 0x108   :  { %140 = vrot.lane.b32.xlu0 %v130_v12, %s1827_s12 }
 0x10b   :  { %144 = vrot.lane.b32.xlu1 %v130_v12, %s1826_s11 }
 0x10c   :  { %142 = vrot.lane.b32.xlu0 %v135_v10, %s1827_s12 }
 0x10f   :  { %150 = vrot.lane.b32.xlu1 %v135_v10, %s1829_s2 }
 0x110   :  { %148 = vrot.lane.b32.xlu0 %v130_v12, %s1829_s2 }
 0x113   :  { %154 = vrot.lane.b32.xlu1 %v135_v10, %s1830_s13 }
 0x114   :  { %152 = vrot.lane.b32.xlu0 %v130_v12, %s1830_s13 }
 0x179   :  { %v147_v14 = vpop.permute.xlu1 %146 }
 0x17a   :  { %v141_v15 = vpop.permute.xlu0 %140 }
 0x17b   :  { %309 = vrot.lane.b32.xlu0 %v141_v15, %s1830_s13 }
 0x17d   :  { %v145_v16 = vpop.permute.xlu1 %144 }
 0x17e   :  { %v143_v17 = vpop.permute.xlu0 %142 }
 0x17f   :  { %461 = vrot.lane.b32.xlu0 %v145_v16, %s1830_s13  ;;  %385 = vrot.lane.b32.xlu1 %v143_v17, %s1830_s13 }
 0x181   :  { %v151_v19 = vpop.permute.xlu1 %150 }
 0x182   :  { %v149_v18 = vpop.permute.xlu0 %148 }
 0x183   :  { %537 = vrot.lane.b32.xlu1 %v147_v14, %s1830_s13  ;;  %613 = vrot.lane.b32.xlu0 %v149_v18, %s1830_s13 }
 0x185   :  { %v155_v21 = vpop.permute.xlu1 %154 }
 0x186   :  { %v153_v20 = vpop.permute.xlu0 %152 }
 0x187   :  { %689 = vrot.lane.b32.xlu1 %v151_v19, %s1830_s13  ;;  %156 = vrot.lane.b32.xlu0 %v130_v12, %s1831_s14 }
 0x188   :  { %1613 = vmatpush3.xpose.msk.msra.mxu1 %vm160_vm2, %v153_v20 }
 0x189   :  { %1617 = vmatprep.subr.mxu1 %v1825_v13 }
 0x18b   :  { %1615 = vmatmul.mubr.msk.f32.vlgmr.msra.gmra.mrb[0].mxu1 %vm160_vm2, %v130_v12  ;;  %158 = vrot.lane.b32.xlu1 %v135_v10, %s1831_s14 }
 0x18c   :  { %935 = vrot.lane.b32.xlu0 %v135_v10, %s1832_s15  ;;  %1618 = vmatpush3.xpose.msk.msra.mxu1 %vm160_vm2, %v155_v21 }
 0x18d   :  { %1619 = vmatprep.mubr.msk.f32.mxu1 %vm1828_vm1, %v1825_v13  ;;  %1627 = vmatprep.subr.mxu1 %v1825_v13 }
 0x18f   :  { %1620 = vmatmul.mubr.msk.f32.vlgmr.msra.gmra.mrb[2].mxu1 %vm160_vm2, %v135_v10  ;;  %859 = vrot.lane.b32.xlu1 %v130_v12, %s1832_s15 }
 0x190   :  { %1163 = vrot.lane.b32.xlu0 %v153_v20, %s1832_s15  ;;  %1629 = vmatprep.mubr.msk.f32.mxu1 %vm1828_vm1, %v1825_v13 }
 0x193   :  { %1087 = vrot.lane.b32.xlu1 %v147_v14, %s1832_s15 }
 0x197   :  { %1239 = vrot.lane.b32.xlu1 %v155_v21, %s1832_s15 }
 0x19b   :  { %1011 = vrot.lane.b32.xlu1 %v145_v16, %s1832_s15 }
 0x1ed   :  { %v310_v22 = vpop.permute.xlu0 %309 }
 0x1ee   :  { %1623 = vmatpush3.xpose.msk.msra.mxu0 %vm160_vm2, %v310_v22 }
 0x1ef   :  { %1632 = vmatprep.subr.mxu0 %v1825_v13 }
 0x1f1   :  { %v386_v23 = vpop.permute.xlu1 %385  ;;  %1625 = vmatmul.mubr.msk.f32.vlgmr.msra.gmra.mrb[2].mxu0 %vm160_vm2, %v141_v15  ;;  %v462_v24 = vpop.permute.xlu0 %461 }
 0x1f2   :  { %1628 = vmatpush3.xpose.msk.msra.mxu1 %vm160_vm2, %v386_v23  ;;  %1633 = vmatpush3.xpose.msk.msra.mxu0 %vm160_vm2, %v462_v24 }
 0x1f3   :  { %1634 = vmatprep.mubr.msk.f32.mxu0 %vm1828_vm1, %v1825_v13  ;;  %1637 = vmatprep.subr.mxu1 %v1825_v13 }
 0x1f4   :  { %1642 = vmatprep.subr.mxu0 %v1825_v13 }
 0x1f5   :  { %v538_v25 = vpop.permute.xlu1 %537  ;;  %1630 = vmatmul.mubr.msk.f32.vlgmr.msra.gmra.mrb[4].mxu1 %vm160_vm2, %v143_v17  ;;  %1635 = vmatmul.mubr.msk.f32.vlgmr.msra.gmra.mrb[4].mxu0 %vm160_vm2, %v145_v16  ;;  %v614_v26 = vpop.permute.xlu0 %613 }
 0x1f6   :  { %1638 = vmatpush3.xpose.msk.msra.mxu1 %vm160_vm2, %v538_v25  ;;  %1643 = vmatpush3.xpose.msk.msra.mxu0 %vm160_vm2, %v614_v26 }
 0x1f7   :  { %1639 = vmatprep.mubr.msk.f32.mxu1 %vm1828_vm1, %v1825_v13  ;;  %1644 = vmatprep.mubr.msk.f32.mxu0 %vm1828_vm1, %v1825_v13 }
 0x1f8   :  { %1647 = vmatprep.subr.mxu1 %v1825_v13  ;;  %1652 = vmatprep.subr.mxu0 %v1825_v13 }
 0x1f9   :  { %v690_v27 = vpop.permute.xlu1 %689  ;;  %1640 = vmatmul.mubr.msk.f32.vlgmr.msra.gmra.mrb[6].mxu1 %vm160_vm2, %v147_v14  ;;  %1645 = vmatmul.mubr.msk.f32.vlgmr.msra.gmra.mrb[6].mxu0 %vm160_vm2, %v149_v18  ;;  %v1936_v28 = vpop.permute.xlu0 %156 }
 0x1fa   :  { %1648 = vmatpush3.xpose.msk.msra.mxu1 %vm160_vm2, %v690_v27  ;;  %1649 = vmatprep.mubr.msk.f32.mxu1 %vm1828_vm1, %v1825_v13 }
 0x1fb   :  { %1657 = vmatprep.subr.mxu1 %v1825_v13  ;;  %1654 = vmatprep.mubr.msk.f32.mxu0 %vm1828_vm1, %v1825_v13 }
 0x1fd   :  { %v159_v29 = vpop.permute.xlu1 %158  ;;  %1650 = vmatmul.mubr.msk.f32.vlgmr.msra.gmra.mrb[8].mxu1 %vm160_vm2, %v151_v19 }
 0x1fe   :  { %v936_v30 = vpop.permute.xlu0 %935  ;;  %1659 = vmatprep.mubr.msk.f32.mxu1 %vm1828_vm1, %v1825_v13 }
 0x1ff   :  { %1658 = vmatpush3.msra.mxu1 %v936_v30 }
 0x200   :  { %1667 = vmatprep.subr.mxu1 %v1825_v13 }
 0x201   :  { %v860_v31 = vpop.permute.xlu1 %859 }
 0x202   :  { %1653 = vmatpush3.msra.mxu0 %v860_v31  ;;  %v1164_v16 = vpop.permute.xlu0 %1163 }
 0x203   :  { %1662 = vmatprep.subr.mxu0 %v1825_v13 }
 0x205   :  { %v1088_v14 = vpop.permute.xlu1 %1087 }
 0x209   :  { %v1240_v15 = vpop.permute.xlu1 %1239 }
 0x20d   :  { %v1012_v17 = vpop.permute.xlu1 %1011 }
 0x25e   :  { %v231_v35 = vpop.f32.mrb[0].mxu1 }
 0x25f   :  { %v771_v38 = vmul.f32 0.35355338, %v231_v35  ;;  %v1616_v39 = vpop.f32.mrb[1].mxu1 }
 0x261   :  { %v779_v40 = vadd.f32 %v771_v38, %v770_v37 }
 0x262   :  { %v305_v41 = vpop.f32.mrb[2].mxu1 }
 0x263   :  { %v772_v42 = vmul.f32 0.35355338, %v305_v41  ;;  %v1621_v43 = vpop.f32.mrb[3].mxu1  ;;  %v787_v44 = vsel %vm160_vm2, %v779_v40, -inf }
 0x264   :  { %788 = vmax.xlane.f32.xlu0 %v787_v44 }
 0x265   :  { %v780_v45 = vadd.f32 %v772_v42, %v770_v37 }
 0x267   :  { %v790_v46 = vsel %vm160_vm2, %v780_v45, -inf }
 0x268   :  { %791 = vmax.xlane.f32.xlu1 %v790_v46 }
 0x2c4   :  { %v381_v47 = vpop.f32.mrb[2].mxu0 }
 0x2c5   :  { %v1626_v48 = vpop.f32.mrb[3].mxu0  ;;  %v773_v55 = vmul.f32 0.35355338, %v381_v47 }
 0x2c7   :  { %v781_v2 = vadd.f32 %v773_v55, %v770_v37 }
 0x2c8   :  { %v457_v49 = vpop.f32.mrb[4].mxu1  ;;  %v533_v50 = vpop.f32.mrb[4].mxu0 }
 0x2c9   :  { %v774_v51 = vmul.f32 0.35355338, %v457_v49  ;;  %v775_v52 = vmul.f32 0.35355338, %v533_v50  ;;  %v1631_v53 = vpop.f32.mrb[5].mxu1  ;;  %v1636_v54 = vpop.f32.mrb[5].mxu0 }
 0x2ca   :  { %v793_v8 = vsel %vm160_vm2, %v781_v2, -inf }
 0x2cb   :  { %v782_v56 = vadd.f32 %v774_v51, %v770_v37  ;;  %v1951_v57 = vadd.f32 %v775_v52, %v770_v37 }
 0x2cc   :  { %v609_v58 = vpop.f32.mrb[6].mxu1  ;;  %v685_v59 = vpop.f32.mrb[6].mxu0 }
 0x2cd   :  { %v777_v60 = vmul.f32 0.35355338, %v685_v59  ;;  %v1641_v61 = vpop.f32.mrb[7].mxu1  ;;  %v1646_v62 = vpop.f32.mrb[7].mxu0  ;;  %v776_v63 = vmul.f32 0.35355338, %v609_v58 }
 0x2ce   :  { %v796_v0 = vsel %vm160_vm2, %v782_v56, -inf  ;;  %v799_v1 = vsel %vm160_vm2, %v1951_v57, -inf }
 0x2cf   :  { %797 = vmax.xlane.f32.xlu0 %v796_v0  ;;  %800 = vmax.xlane.f32.xlu1 %v799_v1  ;;  %v785_v3 = vadd.f32 %v777_v60, %v770_v37  ;;  %v784_v9 = vadd.f32 %v776_v63, %v770_v37 }
 0x2d0   :  { %v761_v4 = vpop.f32.mrb[8].mxu1 }
 0x2d1   :  { %v1651_v5 = vpop.f32.mrb[9].mxu1  ;;  %v805_v6 = vsel %vm160_vm2, %v785_v3, -inf  ;;  %v778_v7 = vmul.f32 0.35355338, %v761_v4  ;;  %v802_v10 = vsel %vm160_vm2, %v784_v9, -inf }
 0x2d3   :  { %794 = vmax.xlane.f32.xlu0 %v793_v8  ;;  %806 = vmax.xlane.f32.xlu1 %v805_v6  ;;  %v786_v11 = vadd.f32 %v778_v7, %v770_v37 }
 0x2d5   :  { %v808_v12 = vsel %vm160_vm2, %v786_v11, -inf }
 0x2d7   :  { %803 = vmax.xlane.f32.xlu0 %v802_v10 }
 0x2db   :  { %809 = vmax.xlane.f32.xlu0 %v808_v12 }
 0x2e4   :  { %1391 = vrot.lane.b32.xlu1 %v159_v29, %s1832_s15 }
 0x2f1   :  { %1315 = vrot.lane.b32.xlu0 %v1936_v28, %s1832_s15  ;;  %v789_v18 = vpop.xlane.xlu0 %788 }
 0x2f2   :  { %v811_v19 = vsub.f32 %v779_v40, %v789_v18 }
 0x2f4   :  { %v819_v20 = vmul.f32 1.442695, %v811_v19 }
 0x2f5   :  { %v792_v21 = vpop.xlane.xlu1 %791 }
 0x2f6   :  { %1717 = vpow2.f32 %v819_v20  ;;  %v812_v22 = vsub.f32 %v780_v45, %v792_v21 }
 0x2f8   :  { %v821_v23 = vmul.f32 1.442695, %v812_v22 }
 0x2fa   :  { %1719 = vpow2.f32 %v821_v23 }
 0x300   :  { %v1718_v24 = vpop.eup %1717 }
 0x301   :  { %1655 = vmatmul.mubr.msk.f32.vlgmr.msra.gmra.mrb[8].mxu0 %vm160_vm2, %v1718_v24  ;;  %v835_v55 = vsel %vm160_vm2, %v1718_v24, 0.0 }
 0x302   :  { %1663 = vmatpush3.msra.mxu0 %v1012_v17  ;;  %1664 = vmatprep.mubr.msk.f32.mxu0 %vm1828_vm1, %v1825_v13 }
 0x303   :  { %1672 = vmatprep.subr.mxu0 %v1825_v13 }
 0x304   :  { %v1967_v25 = vpop.eup %1719 }
 0x305   :  { %1660 = vmatmul.mubr.msk.f32.vlgmr.msra.gmra.mrb[10].mxu1 %vm160_vm2, %v1967_v25  ;;  %v838_v59 = vsel %vm160_vm2, %v1967_v25, 0.0 }
 0x306   :  { %1668 = vmatpush3.msra.mxu1 %v1088_v14  ;;  %1669 = vmatprep.mubr.msk.f32.mxu1 %vm1828_vm1, %v1825_v13 }
 0x307   :  { %1677 = vmatprep.subr.mxu1 %v1825_v13 }
 0x35c   :  { %v801_v26 = vpop.xlane.xlu1 %800  ;;  %v798_v27 = vpop.xlane.xlu0 %797 }
 0x35d   :  { %v814_v28 = vsub.f32 %v782_v56, %v798_v27  ;;  %v815_v34 = vsub.f32 %v1951_v57, %v801_v26 }
 0x35f   :  { %v825_v29 = vmul.f32 1.442695, %v814_v28  ;;  %v827_v39 = vmul.f32 1.442695, %v815_v34 }
 0x360   :  { %v807_v30 = vpop.xlane.xlu1 %806  ;;  %v795_v31 = vpop.xlane.xlu0 %794 }
 0x361   :  { %v817_v32 = vsub.f32 %v785_v3, %v807_v30  ;;  %v813_v33 = vsub.f32 %v781_v2, %v795_v31  ;;  %1721 = vpow2.f32 %v825_v29 }
 0x363   :  { %v831_v35 = vmul.f32 1.442695, %v817_v32  ;;  %v823_v36 = vmul.f32 1.442695, %v813_v33 }
 0x364   :  { %v804_v37 = vpop.xlane.xlu0 %803  ;;  %v1392_v52 = vpop.permute.xlu1 %1391 }
 0x365   :  { %1723 = vpow2.f32 %v831_v35  ;;  %v816_v38 = vsub.f32 %v784_v9, %v804_v37 }
 0x366   :  { %1725 = vpow2.f32 %v823_v36 }
 0x367   :  { %v829_v40 = vmul.f32 1.442695, %v816_v38 }
 0x368   :  { %v810_v41 = vpop.xlane.xlu0 %809 }
 0x369   :  { %1727 = vpow2.f32 %v829_v40  ;;  %v818_v42 = vsub.f32 %v786_v11, %v810_v41 }
 0x36a   :  { %1729 = vpow2.f32 %v827_v39 }
 0x36b   :  { %v833_v43 = vmul.f32 1.442695, %v818_v42  ;;  %v1722_v44 = vpop.eup %1721 }
 0x36c   :  { %1670 = vmatmul.mubr.msk.f32.vlgmr.msra.gmra.mrb[12].mxu1 %vm160_vm2, %v1722_v44  ;;  %v844_v45 = vsel %vm160_vm2, %v1722_v44, 0.0  ;;  %v1316_v54 = vpop.permute.xlu0 %1315 }
 0x36d   :  { %1731 = vpow2.f32 %v833_v43  ;;  %1678 = vmatpush3.msra.mxu1 %v1240_v15  ;;  %845 = vadd.xlane.f32.xlu1 %v844_v45 }
 0x36e   :  { %1679 = vmatprep.mubr.msk.f32.mxu1 %vm1828_vm1, %v1825_v13  ;;  %1687 = vmatprep.subr.mxu1 %v1825_v13 }
 0x36f   :  { %v1724_v46 = vpop.eup %1723 }
 0x370   :  { %v1726_v47 = vpop.eup %1725  ;;  %v853_v48 = vsel %vm160_vm2, %v1724_v46, 0.0 }
 0x371   :  { %1665 = vmatmul.mubr.msk.f32.vlgmr.msra.gmra.mrb[10].mxu0 %vm160_vm2, %v1726_v47  ;;  %v841_v49 = vsel %vm160_vm2, %v1726_v47, 0.0  ;;  %854 = vadd.xlane.f32.xlu1 %v853_v48 }
 0x372   :  { %1673 = vmatpush3.msra.mxu0 %v1164_v16  ;;  %842 = vadd.xlane.f32.xlu0 %v841_v49 }
 0x373   :  { %v1728_v50 = vpop.eup %1727  ;;  %1674 = vmatprep.mubr.msk.f32.mxu0 %vm1828_vm1, %v1825_v13  ;;  %1682 = vmatprep.subr.mxu0 %v1825_v13 }
 0x374   :  { %v1730_v51 = vpop.eup %1729  ;;  %1680 = vmatmul.mubr.msk.f32.vlgmr.msra.gmra.mrb[14].mxu1 %vm160_vm2, %v1728_v50  ;;  %v850_v53 = vsel %vm160_vm2, %v1728_v50, 0.0 }
 0x375   :  { %1675 = vmatmul.mubr.msk.f32.vlgmr.msra.gmra.mrb[12].mxu0 %vm160_vm2, %v1730_v51  ;;  %1688 = vmatpush3.msra.mxu1 %v1392_v52  ;;  %v847_v57 = vsel %vm160_vm2, %v1730_v51, 0.0 }
 0x376   :  { %1683 = vmatpush3.msra.mxu0 %v1316_v54  ;;  %836 = vadd.xlane.f32.xlu1 %v835_v55 }
 0x377   :  { %v1732_v56 = vpop.eup %1731  ;;  %851 = vadd.xlane.f32.xlu0 %v850_v53  ;;  %1684 = vmatprep.mubr.msk.f32.mxu0 %vm1828_vm1, %v1825_v13 }
 0x378   :  { %1689 = vmatprep.mubr.msk.f32.mxu1 %vm1828_vm1, %v1825_v13  ;;  %v856_v58 = vsel %vm160_vm2, %v1732_v56, 0.0 }
 0x379   :  { %1685 = vmatmul.mubr.msk.f32.vlgmr.msra.gmra.mrb[14].mxu0 %vm160_vm2, %v1724_v46  ;;  %1690 = vmatmul.mubr.msk.f32.vlgmr.msra.gmra.mrb[16].mxu1 %vm160_vm2, %v1732_v56 }
 0x37b   :  { %848 = vadd.xlane.f32.xlu0 %v847_v57 }
 0x37f   :  { %857 = vadd.xlane.f32.xlu0 %v856_v58 }
 0x383   :  { %839 = vadd.xlane.f32.xlu0 %v838_v59 }
 0x3d4   :  { %v931_v60 = vpop.f32.mrb[8].mxu0 }
 0x3d5   :  { %v1656_v61 = vpop.f32.mrb[9].mxu0 }
 0x3d8   :  { %v2000_v62 = vpop.f32.mrb[10].mxu1 }
 0x3d9   :  { %v1661_v63 = vpop.f32.mrb[11].mxu1 }
 0x3fa   :  { %v846_v0 = vpop.xlane.xlu1 %845 }
 0x3fb   :  { %1733 = vrcp.f32 %v846_v0 }
 0x3fe   :  { %v855_v3 = vpop.xlane.xlu1 %854 }
 0x3ff   :  { %v843_v13 = vpop.xlane.xlu0 %842 }
 0x400   :  { %1735 = vrcp.f32 %v843_v13 }
 0x403   :  { %v837_v30 = vpop.xlane.xlu1 %836 }
 0x404   :  { %v852_v1 = vpop.xlane.xlu0 %851 }
 0x405   :  { %1737 = vrcp.f32 %v852_v1  ;;  %v1734_v4 = vpop.eup %1733 }
 0x406   :  { %1739 = vrcp.f32 %v855_v3 }
 0x408   :  { %v849_v2 = vpop.xlane.xlu0 %848 }
 0x409   :  { %1741 = vrcp.f32 %v849_v2 }
 0x40a   :  { %v1736_v9 = vpop.eup %1735 }
 0x40c   :  { %v858_v8 = vpop.xlane.xlu0 %857 }
 0x40d   :  { %1743 = vrcp.f32 %v858_v8 }
 0x40e   :  { %1745 = vrcp.f32 %v837_v30 }
 0x40f   :  { %v1738_v14 = vpop.eup %1737 }
 0x410   :  { %v1740_v20 = vpop.eup %1739  ;;  %v840_v31 = vpop.xlane.xlu0 %839 }
 0x411   :  { %1747 = vrcp.f32 %v840_v31 }
 0x413   :  { %v1742_v21 = vpop.eup %1741 }
 0x417   :  { %v1744_v28 = vpop.eup %1743 }
 0x418   :  { %v1746_v33 = vpop.eup %1745 }
 0x419   :  { %v1468_v37 = vmul.f32 %v1746_v33, %v931_v60 }
 0x41b   :  { %v1748_v36 = vpop.eup %1747 }
 0x41c   :  { %v1470_v41 = vmul.f32 %v1748_v36, %v2000_v62 }
 0x43f   :  { %v1159_v5 = vpop.f32.mrb[12].mxu1 }
 0x440   :  { %v1474_v6 = vmul.f32 %v1734_v4, %v1159_v5  ;;  %v1671_v7 = vpop.f32.mrb[13].mxu1 }
 0x442   :  { %1487 = vrot.lane.b32.xlu0 %v1474_v6, %s1834_s16 }
 0x444   :  { %v1083_v10 = vpop.f32.mrb[10].mxu0 }
 0x445   :  { %v1472_v11 = vmul.f32 %v1736_v9, %v1083_v10  ;;  %v1666_v12 = vpop.f32.mrb[11].mxu0 }
 0x447   :  { %1485 = vrot.lane.b32.xlu1 %v1472_v11, %s1834_s16  ;;  %v1311_v15 = vpop.f32.mrb[14].mxu1 }
 0x448   :  { %v1235_v16 = vpop.f32.mrb[12].mxu0  ;;  %v1478_v17 = vmul.f32 %v1738_v14, %v1311_v15  ;;  %v1681_v18 = vpop.f32.mrb[15].mxu1 }
 0x449   :  { %v1676_v19 = vpop.f32.mrb[13].mxu0  ;;  %v1476_v24 = vmul.f32 %v1742_v21, %v1235_v16 }
 0x44b   :  { %1495 = vrot.lane.b32.xlu1 %v1478_v17, %s1835_s17 }
 0x44c   :  { %v1387_v22 = vpop.f32.mrb[14].mxu0  ;;  %v1463_v23 = vpop.f32.mrb[16].mxu1 }
 0x44d   :  { %v1480_v25 = vmul.f32 %v1740_v20, %v1387_v22  ;;  %v1686_v26 = vpop.f32.mrb[15].mxu0  ;;  %v1691_v27 = vpop.f32.mrb[17].mxu1  ;;  %v1482_v29 = vmul.f32 %v1744_v28, %v1463_v23 }
 0x44f   :  { %1501 = vrot.lane.b32.xlu0 %v1480_v25, %s1836_s18  ;;  %1493 = vrot.lane.b32.xlu1 %v1476_v24, %s1835_s17 }
 0x453   :  { %1503 = vrot.lane.b32.xlu1 %v1482_v29, %s1836_s18 }
 0x4b4   :  { %v1488_v34 = vpop.permute.xlu0 %1487 }
 0x4b5   :  { %v1509_v44 = vsel %vm1507_vm4, %v1470_v41, %v1488_v34 }
 0x4b9   :  { %v1486_v32 = vpop.permute.xlu1 %1485 }
 0x4ba   :  { %v1508_v38 = vsel %vm1507_vm4, %v1468_v37, %v1486_v32 }
 0x4bd   :  { %v1496_v35 = vpop.permute.xlu1 %1495 }
 0x4be   :  { %v1511_v45 = vsel %vm56_vm0, %v1509_v44, %v1496_v35 }
 0x4c1   :  { %v1494_v39 = vpop.permute.xlu1 %1493  ;;  %v1502_v40 = vpop.permute.xlu0 %1501 }
 0x4c2   :  { %v1510_v42 = vsel %vm56_vm0, %v1508_v38, %v1494_v39 }
 0x4c3   :  { %v1513_v43 = vsel %vm1512_vm5, %v1510_v42, %v1502_v40 }
 0x4c4   :  { %1516 = vst.msk [vmem:[#allocation7] sm:$0xff] %vm1515_vm6, %v1513_v43 }
 0x4c5   :  { %v1504_v46 = vpop.permute.xlu1 %1503 }
 0x4c6   :  { %v1514_v47 = vsel %vm1512_vm5, %v1511_v45, %v1504_v46 }
 0x4c7   :  { %1517 = vst.msk [vmem:[#allocation7 + $0x8] sm:$0xff] %vm1515_vm6, %v1514_v47 }
 0x4c8   :  { %1804 = shalt.err (!%p1801_p6)
}
 0x4c9   :  { %s1805_s26 = scalar_lea.hbm %s2023_s3, 256 }
 0x4ca   :  { %p1806_p7 = scmp.ne.s32.totalorder %s2023_s3, %s1805_s26  ;;  %p1809_p8 = scmp.lt.u32.totalorder %s1805_s26, %s2023_s3 }
 0x4cc   :  { %p1811_p9 = pnand %p1809_p8, %p1806_p7 }
 0x4ce   :  { %1814 = shalt.err (!%p1811_p9)
}
 0x4cf   :  { %1529 = dma.vmem_to_hbm [thread:$0]  %s1524_s20, 256, %s2023_s3, [#allocation4], %s1822_s22, %s1822_s22, %s1823_s23  }
 0x4d0   :  { %1819 = dma.done.wait [#allocation4], 256  }
 0x4d1   :  { %1820 = vsyncadd [#allocation4], 4294967040 }
 0x4d2   :  { %1533 = vsyncpa [#allocation3], 1 }
 0x4d3   :  { %1534 = vsyncpa [#allocation6], 1 }
 0x4d4   :  { %1535 = vsyncpa [#allocation4], 1 }

</bundles_post_ra>
